<compile_context>
chip_gen: v6e
topology: v6e:2x2x1
jax: 0.10.0
libtpu: 0.0.40
codegen_flags: <defaults>
</compile_context>

<pallas_src>
import functools

import jax
import jax.numpy as jnp
from jax import lax
from jax.experimental import pallas as pl
from jax.experimental.pallas import tpu as pltpu


def _round_up(v, m):
    return (v + m - 1) // m * m


def _conv3x3_kernel(wpos_ref, x_ref, top_ref, bot_ref, w_ref, b_ref, o_ref,
                    slab_ref, *, W, TR, cin, k_used):
    """One (Cin, TR*W) spatial tile of one batch element.

    wpos_ref: (1, TR*W) int32   w coordinate of every lane in the tile
    x_ref:    (Cin, TR*W)       activation tile (image rows r*TR .. r*TR+TR-1)
    top_ref:  (3, Cin, W)       row above the tile, pre-shifted for dw=-1,0,+1
    bot_ref:  (3, Cin, W)       row below the tile, pre-shifted for dw=-1,0,+1
    w_ref:    (Cout, Kp)        weights, column = (kh*3 + kw)*Cin + c, zero-padded
    b_ref:    (Cout, 1)         bias (f32)
    o_ref:    (Cout, TR*W)      lane-dense output tile
    slab_ref: (Kp, TR*W)        VMEM im2col scratch (compute dtype)
    """
    trw = TR * W
    cdt = slab_ref.dtype

    x = x_ref[...].astype(cdt)                      # cast on entry to the slab

    # Hoisted left / right validity masks (only the w borders need masking;
    # the vertical borders are handled exactly by the halo inputs).
    wpos = wpos_ref[...]                            # (1, TR*W) int32
    ok_l = wpos >= 1                                # has a valid left neighbour
    ok_r = wpos <= W - 2                            # has a valid right neighbour

    t = 0
    for dh in (-1, 0, 1):
        for dw in (-1, 0, 1):
            s = dh * W + dw                         # flat-index shift of this tap
            v = x if s == 0 else pltpu.roll(x, (-s) % trw, axis=1)
            if dw == -1:
                v = jnp.where(ok_l, v, 0.0)
            elif dw == 1:
                v = jnp.where(ok_r, v, 0.0)
            rows = pl.ds(t * cin, cin)
            slab_ref[rows, :] = v
            if dh != 0:
                # The first (dh=-1) / last (dh=+1) output row of the tile must
                # take its vertical neighbour from the halo input instead of
                # the in-tile roll wrap-around.
                halo = (top_ref if dh == -1 else bot_ref)[dw + 1]   # (Cin, W)
                lo = 0 if dh == -1 else (TR - 1) * W
                slab_ref[rows, pl.ds(lo, W)] = halo
            t += 1

    # Zero the K-padding rows (their weight columns are zero, but uninitialized
    # VMEM could hold NaNs and 0 * NaN would poison the accumulator).
    kp = slab_ref.shape[0]
    if kp > k_used:
        slab_ref[pl.ds(k_used, kp - k_used), :] = jnp.zeros(
            (kp - k_used, trw), dtype=cdt)

    # Single MXU matmul per tile: (Cout, Kp) @ (Kp, TR*W), f32 accumulation.
    acc = jnp.dot(w_ref[...], slab_ref[...], preferred_element_type=jnp.float32)
    o_ref[...] = (acc + b_ref[...]).astype(o_ref.dtype)


@functools.partial(jax.jit, static_argnames=("compute_dtype", "row_tile"))
def csdn_tem_forward(x_nchw, weight, bias, *, compute_dtype=jnp.bfloat16,
                     row_tile=None):
    """3x3 conv, stride 1, padding 1 (== nn.Conv2d(in_ch, out_ch, 3, 1, 1)).

    x_nchw: (N, Cin, H, W) float32
    weight: (Cout, Cin, 3, 3)  (PyTorch layout)
    bias:   (Cout,)
    compute_dtype: dtype of the im2col slab / weight slab (MXU operands);
                   accumulation is always f32.
    row_tile: optional cap on the number of image rows per grid step
              (None -> derived from the VMEM budget).
    returns: (N, Cout, H, W) in x's dtype.
    """
    N, cin, H, W = x_nchw.shape
    cout = weight.shape[0]
    out_dtype = x_nchw.dtype
    cbytes = jnp.dtype(compute_dtype).itemsize

    k_used = 9 * cin
    k_align = 16 if cbytes == 2 else 8
    kp = _round_up(k_used, k_align)

    # ---- pick the row tile from the per-generation VMEM budget -------------
    try:
        vmem_cap = pltpu.get_tpu_info().vmem_capacity_bytes
    except Exception:  # pragma: no cover - conservative fallback
        vmem_cap = 64 * 1024 * 1024
    budget = max(8 << 20, min(vmem_cap // 4, 28 << 20))

    def vmem_need(tr):
        trw_ = tr * W
        return (2 * cin * trw_ * x_nchw.dtype.itemsize     # x tile (dbl buffered)
                + 2 * 2 * 3 * cin * max(W, 128) * cbytes   # halo tiles
                + 2 * cout * kp * cbytes                   # weight slab
                + 2 * cout * 128 * 4                       # bias
                + 2 * cout * trw_ * out_dtype.itemsize     # output tile
                + kp * trw_ * cbytes)                      # im2col scratch

    divisors = [d for d in range(1, H + 1) if H % d == 0]
    # The lane dim of the x / out blocks must be a multiple of 128 unless the
    # block spans the whole flattened image.
    valid = [d for d in divisors if (d * W) % 128 == 0 or d == H]
    if row_tile is not None:
        fit = [d for d in valid if d <= row_tile]
    else:
        fit = [d for d in valid if vmem_need(d) <= budget]
    TR = max(fit) if fit else min(valid)
    R = H // TR
    trw = TR * W

    # ---- host-side operand prep (free reshapes + tiny gathers only) --------
    x_flat = x_nchw.reshape(N, cin, H * W)

    # (Cout, Cin, 3, 3) -> (Cout, 9*Cin), col = (kh*3 + kw)*Cin + c, K padded.
    w_slab = jnp.transpose(weight, (0, 2, 3, 1)).reshape(cout, k_used)
    w_slab = jnp.pad(w_slab, ((0, 0), (0, kp - k_used))).astype(compute_dtype)
    b2 = bias.reshape(cout, 1).astype(jnp.float32)

    # Halo rows: for tile r, the image row just above / below it (zero rows at
    # the image border).  Shapes (N, Cin, R, W); tiny strided gathers.
    zrow = jnp.zeros((N, cin, 1, W), x_nchw.dtype)
    if R > 1:
        above = jnp.concatenate(
            [zrow, x_nchw[:, :, TR - 1:H - TR:TR, :]], axis=2)
        below = jnp.concatenate(
            [x_nchw[:, :, TR:H - TR + 1:TR, :], zrow], axis=2)
    else:
        above = zrow
        below = zrow

    def _dw_variants(rows):
        # (N, Cin, R, W) -> (N, R, 3, Cin, W): the row pre-shifted for
        # dw = -1, 0, +1 with the horizontal border already zeroed.
        z = jnp.zeros_like(rows[..., :1])
        left = jnp.concatenate([z, rows[..., :-1]], axis=-1)    # value at w-1
        right = jnp.concatenate([rows[..., 1:], z], axis=-1)    # value at w+1
        stacked = jnp.stack([left, rows, right], axis=2)        # (N, Cin, 3, R, W)
        return jnp.transpose(stacked, (0, 3, 2, 1, 4)).astype(compute_dtype)

    top_all = _dw_variants(above)
    bot_all = _dw_variants(below)

    # w coordinate of every lane of one tile (loaded once; avoids in-kernel mod).
    wpos = jnp.tile(jnp.arange(W, dtype=jnp.int32), TR).reshape(1, trw)

    kernel = functools.partial(_conv3x3_kernel, W=W, TR=TR, cin=cin,
                               k_used=k_used)

    need = vmem_need(TR)
    vmem_limit = int(min(max(2 * need + (8 << 20), 32 << 20), 64 << 20))

    grid_spec = pltpu.PrefetchScalarGridSpec(
        num_scalar_prefetch=0,
        grid=(N, R),
        in_specs=[
            pl.BlockSpec((1, trw), lambda n, r: (0, 0)),                    # wpos
            pl.BlockSpec((pl.Squeezed(), cin, trw),
                         lambda n, r: (n, 0, r)),                           # x tile
            pl.BlockSpec((pl.Squeezed(), pl.Squeezed(), 3, cin, W),
                         lambda n, r: (n, r, 0, 0, 0)),                     # top halo
            pl.BlockSpec((pl.Squeezed(), pl.Squeezed(), 3, cin, W),
                         lambda n, r: (n, r, 0, 0, 0)),                     # bottom halo
            pl.BlockSpec((cout, kp), lambda n, r: (0, 0)),                  # weights
            pl.BlockSpec((cout, 1), lambda n, r: (0, 0)),                   # bias
        ],
        out_specs=pl.BlockSpec((pl.Squeezed(), cout, trw),
                               lambda n, r: (n, 0, r)),
        scratch_shapes=[pltpu.VMEM((kp, trw), compute_dtype)],
    )

    out_flat = pl.pallas_call(
        kernel,
        out_shape=jax.ShapeDtypeStruct((N, cout, H * W), out_dtype),
        grid_spec=grid_spec,
        compiler_params=pltpu.CompilerParams(
            dimension_semantics=("parallel", "parallel"),
            vmem_limit_bytes=vmem_limit),
    )(wpos, x_flat, top_all, bot_all, w_slab, b2)

    return out_flat.reshape(N, cout, H, W)


if __name__ == "__main__":
    key = jax.random.PRNGKey(0)
    k_x, k_w, k_b = jax.random.split(key, 3)

    N, in_ch, out_ch, H, W = 2, 4, 8, 16, 16

    x = jax.random.normal(k_x, (N, in_ch, H, W), dtype=jnp.float32)
    weight = 0.1 * jax.random.normal(k_w, (out_ch, in_ch, 3, 3), dtype=jnp.float32)
    bias = 0.1 * jax.random.normal(k_b, (out_ch,), dtype=jnp.float32)

    # Reference: XLA conv with the same semantics as the PyTorch module.
    ref_f32 = lax.conv_general_dilated(
        x, weight, window_strides=(1, 1), padding=((1, 1), (1, 1)),
        dimension_numbers=("NCHW", "OIHW", "NCHW"),
    ) + bias.reshape(1, out_ch, 1, 1)
    ref_f32 = jax.block_until_ready(ref_f32)

    # f32 compute path; row_tile=8 forces two row-tiles per image so the
    # cross-tile halo path is exercised and checked.
    out_f32 = csdn_tem_forward(x, weight, bias,
                               compute_dtype=jnp.float32, row_tile=8)
    out_f32 = jax.block_until_ready(out_f32)
    assert out_f32.shape == (N, out_ch, H, W)
    assert jnp.allclose(out_f32, ref_f32, atol=1e-4, rtol=1e-4)

    # bf16 slab/weight path (MXU-native on v6e/v7x) with f32 accumulation;
    # compare against a reference whose inputs were rounded to bf16.
    xq = x.astype(jnp.bfloat16).astype(jnp.float32)
    wq = weight.astype(jnp.bfloat16).astype(jnp.float32)
    ref_bf16 = lax.conv_general_dilated(
        xq, wq, window_strides=(1, 1), padding=((1, 1), (1, 1)),
        dimension_numbers=("NCHW", "OIHW", "NCHW"),
    ) + bias.reshape(1, out_ch, 1, 1)
    ref_bf16 = jax.block_until_ready(ref_bf16)

    out_bf16 = csdn_tem_forward(x, weight, bias,
                                compute_dtype=jnp.bfloat16, row_tile=8)
    out_bf16 = jax.block_until_ready(out_bf16)
    assert out_bf16.shape == (N, out_ch, H, W)
    assert jnp.allclose(out_bf16, ref_bf16, atol=2e-3, rtol=2e-3)

    print("KERNEL_OK")
</pallas_src>

<mosaic_0001>
module attributes {stable_mosaic.version = 11 : i64} {
  func.func @_conv3x3_kernel(%arg0: i32, %arg1: i32, %arg2: memref<1x128xi32, #tpu.memory_space<vmem>>, %arg3: memref<1x4x128xf32, #tpu.memory_space<vmem>>, %arg4: memref<1x1x3x4x16xf32, #tpu.memory_space<vmem>>, %arg5: memref<1x1x3x4x16xf32, #tpu.memory_space<vmem>>, %arg6: memref<8x40xf32, #tpu.memory_space<vmem>>, %arg7: memref<8x1xf32, #tpu.memory_space<vmem>>, %arg8: memref<1x8x128xf32, #tpu.memory_space<vmem>>, %arg9: memref<40x128xf32, #tpu.memory_space<vmem>>) attributes {dimension_semantics = [#tpu.dimension_semantics<parallel>, #tpu.dimension_semantics<parallel>], iteration_bounds = array<i64: 2, 2>, scalar_prefetch = 0 : i64, scratch_operands = 1 : i64, tpu.core_type = #tpu.core_type<tc>, window_params = [{pipeline_mode = #tpu.pipeline_mode<synchronous>, transform_indices = @transform_0, window_bounds = array<i64: 1, 128>}, {transform_indices = @transform_1, window_bounds = array<i64: 1, 4, 128>}, {transform_indices = @transform_2, window_bounds = array<i64: 1, 1, 3, 4, 16>}, {transform_indices = @transform_3, window_bounds = array<i64: 1, 1, 3, 4, 16>}, {pipeline_mode = #tpu.pipeline_mode<synchronous>, transform_indices = @transform_4, window_bounds = array<i64: 8, 40>}, {pipeline_mode = #tpu.pipeline_mode<synchronous>, transform_indices = @transform_5, window_bounds = array<i64: 8, 1>}, {transform_indices = @transform_6, window_bounds = array<i64: 1, 8, 128>}]} {
    %c0 = arith.constant 0 : index
    %c0_0 = arith.constant 0 : index
    %c0_1 = arith.constant 0 : index
    %0 = vector.load %arg3[%c0, %c0_0, %c0_1] : memref<1x4x128xf32, #tpu.memory_space<vmem>>, vector<1x4x128xf32>
    %1 = vector.shape_cast %0 : vector<1x4x128xf32> to vector<4x128xf32>
    %c0_2 = arith.constant 0 : index
    %c0_3 = arith.constant 0 : index
    %2 = vector.load %arg2[%c0_2, %c0_3] : memref<1x128xi32, #tpu.memory_space<vmem>>, vector<1x128xi32>
    %c1_i32 = arith.constant 1 : i32
    %3 = vector.broadcast %c1_i32 : i32 to vector<1x128xi32>
    %4 = arith.cmpi sge, %2, %3 : vector<1x128xi32>
    %c14_i32 = arith.constant 14 : i32
    %5 = vector.broadcast %c14_i32 : i32 to vector<1x128xi32>
    %6 = arith.cmpi sle, %2, %5 : vector<1x128xi32>
    %c17_i32 = arith.constant 17 : i32
    %7 = tpu.dynamic_rotate %1 by %c17_i32 dim 1 : vector<4x128xf32>, i32 -> vector<4x128xf32>
    %cst = arith.constant 0.000000e+00 : f32
    %8 = vector.shape_cast %4 : vector<1x128xi1> to vector<1x128xi1>
    %9 = vector.broadcast %8 : vector<1x128xi1> to vector<4x128xi1>
    %10 = vector.broadcast %cst : f32 to vector<4x128xf32>
    %11 = arith.select %9, %7, %10 : vector<4x128xi1>, vector<4x128xf32>
    %c0_4 = arith.constant 0 : index
    %c0_5 = arith.constant 0 : index
    %12 = vector.load %arg9[%c0_4, %c0_5] : memref<40x128xf32, #tpu.memory_space<vmem>>, vector<4x128xf32>
    tpu.vector_store %arg9[%c0_4, %c0_5], %11 {strides = array<i32>} : memref<40x128xf32, #tpu.memory_space<vmem>>, vector<4x128xf32>,
    %c0_6 = arith.constant 0 : index
    %c0_7 = arith.constant 0 : index
    %c0_8 = arith.constant 0 : index
    %c0_9 = arith.constant 0 : index
    %c0_10 = arith.constant 0 : index
    %13 = vector.load %arg4[%c0_6, %c0_7, %c0_8, %c0_9, %c0_10] : memref<1x1x3x4x16xf32, #tpu.memory_space<vmem>>, vector<1x1x1x4x16xf32>
    %14 = vector.shape_cast %13 : vector<1x1x1x4x16xf32> to vector<4x16xf32>
    %c0_11 = arith.constant 0 : index
    %c0_12 = arith.constant 0 : index
    %15 = vector.load %arg9[%c0_11, %c0_12] : memref<40x128xf32, #tpu.memory_space<vmem>>, vector<4x16xf32>
    tpu.vector_store %arg9[%c0_11, %c0_12], %14 {strides = array<i32>} : memref<40x128xf32, #tpu.memory_space<vmem>>, vector<4x16xf32>,
    %c16_i32 = arith.constant 16 : i32
    %16 = tpu.dynamic_rotate %1 by %c16_i32 dim 1 : vector<4x128xf32>, i32 -> vector<4x128xf32>
    %c4 = arith.constant 4 : index
    %c0_13 = arith.constant 0 : index
    %17 = vector.load %arg9[%c4, %c0_13] : memref<40x128xf32, #tpu.memory_space<vmem>>, vector<4x128xf32>
    tpu.vector_store %arg9[%c4, %c0_13], %16 {strides = array<i32>} : memref<40x128xf32, #tpu.memory_space<vmem>>, vector<4x128xf32>,
    %c0_14 = arith.constant 0 : index
    %c0_15 = arith.constant 0 : index
    %c1 = arith.constant 1 : index
    %c0_16 = arith.constant 0 : index
    %c0_17 = arith.constant 0 : index
    %18 = vector.load %arg4[%c0_14, %c0_15, %c1, %c0_16, %c0_17] : memref<1x1x3x4x16xf32, #tpu.memory_space<vmem>>, vector<1x1x1x4x16xf32>
    %19 = vector.shape_cast %18 : vector<1x1x1x4x16xf32> to vector<4x16xf32>
    %c4_18 = arith.constant 4 : index
    %c0_19 = arith.constant 0 : index
    %20 = vector.load %arg9[%c4_18, %c0_19] : memref<40x128xf32, #tpu.memory_space<vmem>>, vector<4x16xf32>
    tpu.vector_store %arg9[%c4_18, %c0_19], %19 {strides = array<i32>} : memref<40x128xf32, #tpu.memory_space<vmem>>, vector<4x16xf32>,
    %c15_i32 = arith.constant 15 : i32
    %21 = tpu.dynamic_rotate %1 by %c15_i32 dim 1 : vector<4x128xf32>, i32 -> vector<4x128xf32>
    %cst_20 = arith.constant 0.000000e+00 : f32
    %22 = vector.shape_cast %6 : vector<1x128xi1> to vector<1x128xi1>
    %23 = vector.broadcast %22 : vector<1x128xi1> to vector<4x128xi1>
    %24 = vector.broadcast %cst_20 : f32 to vector<4x128xf32>
    %25 = arith.select %23, %21, %24 : vector<4x128xi1>, vector<4x128xf32>
    %c8 = arith.constant 8 : index
    %c0_21 = arith.constant 0 : index
    %26 = vector.load %arg9[%c8, %c0_21] : memref<40x128xf32, #tpu.memory_space<vmem>>, vector<4x128xf32>
    tpu.vector_store %arg9[%c8, %c0_21], %25 {strides = array<i32>} : memref<40x128xf32, #tpu.memory_space<vmem>>, vector<4x128xf32>,
    %c0_22 = arith.constant 0 : index
    %c0_23 = arith.constant 0 : index
    %c2 = arith.constant 2 : index
    %c0_24 = arith.constant 0 : index
    %c0_25 = arith.constant 0 : index
    %27 = vector.load %arg4[%c0_22, %c0_23, %c2, %c0_24, %c0_25] : memref<1x1x3x4x16xf32, #tpu.memory_space<vmem>>, vector<1x1x1x4x16xf32>
    %28 = vector.shape_cast %27 : vector<1x1x1x4x16xf32> to vector<4x16xf32>
    %c8_26 = arith.constant 8 : index
    %c0_27 = arith.constant 0 : index
    %29 = vector.load %arg9[%c8_26, %c0_27] : memref<40x128xf32, #tpu.memory_space<vmem>>, vector<4x16xf32>
    tpu.vector_store %arg9[%c8_26, %c0_27], %28 {strides = array<i32>} : memref<40x128xf32, #tpu.memory_space<vmem>>, vector<4x16xf32>,
    %c1_i32_28 = arith.constant 1 : i32
    %30 = tpu.dynamic_rotate %1 by %c1_i32_28 dim 1 : vector<4x128xf32>, i32 -> vector<4x128xf32>
    %cst_29 = arith.constant 0.000000e+00 : f32
    %31 = vector.shape_cast %4 : vector<1x128xi1> to vector<1x128xi1>
    %32 = vector.broadcast %31 : vector<1x128xi1> to vector<4x128xi1>
    %33 = vector.broadcast %cst_29 : f32 to vector<4x128xf32>
    %34 = arith.select %32, %30, %33 : vector<4x128xi1>, vector<4x128xf32>
    %c12 = arith.constant 12 : index
    %c0_30 = arith.constant 0 : index
    %35 = vector.load %arg9[%c12, %c0_30] : memref<40x128xf32, #tpu.memory_space<vmem>>, vector<4x128xf32>
    tpu.vector_store %arg9[%c12, %c0_30], %34 {strides = array<i32>} : memref<40x128xf32, #tpu.memory_space<vmem>>, vector<4x128xf32>,
    %c16 = arith.constant 16 : index
    %c0_31 = arith.constant 0 : index
    %36 = vector.load %arg9[%c16, %c0_31] : memref<40x128xf32, #tpu.memory_space<vmem>>, vector<4x128xf32>
    tpu.vector_store %arg9[%c16, %c0_31], %1 {strides = array<i32>} : memref<40x128xf32, #tpu.memory_space<vmem>>, vector<4x128xf32>,
    %c127_i32 = arith.constant 127 : i32
    %37 = tpu.dynamic_rotate %1 by %c127_i32 dim 1 : vector<4x128xf32>, i32 -> vector<4x128xf32>
    %cst_32 = arith.constant 0.000000e+00 : f32
    %38 = vector.shape_cast %6 : vector<1x128xi1> to vector<1x128xi1>
    %39 = vector.broadcast %38 : vector<1x128xi1> to vector<4x128xi1>
    %40 = vector.broadcast %cst_32 : f32 to vector<4x128xf32>
    %41 = arith.select %39, %37, %40 : vector<4x128xi1>, vector<4x128xf32>
    %c20 = arith.constant 20 : index
    %c0_33 = arith.constant 0 : index
    %42 = vector.load %arg9[%c20, %c0_33] : memref<40x128xf32, #tpu.memory_space<vmem>>, vector<4x128xf32>
    tpu.vector_store %arg9[%c20, %c0_33], %41 {strides = array<i32>} : memref<40x128xf32, #tpu.memory_space<vmem>>, vector<4x128xf32>,
    %c113_i32 = arith.constant 113 : i32
    %43 = tpu.dynamic_rotate %1 by %c113_i32 dim 1 : vector<4x128xf32>, i32 -> vector<4x128xf32>
    %cst_34 = arith.constant 0.000000e+00 : f32
    %44 = vector.shape_cast %4 : vector<1x128xi1> to vector<1x128xi1>
    %45 = vector.broadcast %44 : vector<1x128xi1> to vector<4x128xi1>
    %46 = vector.broadcast %cst_34 : f32 to vector<4x128xf32>
    %47 = arith.select %45, %43, %46 : vector<4x128xi1>, vector<4x128xf32>
    %c24 = arith.constant 24 : index
    %c0_35 = arith.constant 0 : index
    %48 = vector.load %arg9[%c24, %c0_35] : memref<40x128xf32, #tpu.memory_space<vmem>>, vector<4x128xf32>
    tpu.vector_store %arg9[%c24, %c0_35], %47 {strides = array<i32>} : memref<40x128xf32, #tpu.memory_space<vmem>>, vector<4x128xf32>,
    %c0_36 = arith.constant 0 : index
    %c0_37 = arith.constant 0 : index
    %c0_38 = arith.constant 0 : index
    %c0_39 = arith.constant 0 : index
    %c0_40 = arith.constant 0 : index
    %49 = vector.load %arg5[%c0_36, %c0_37, %c0_38, %c0_39, %c0_40] : memref<1x1x3x4x16xf32, #tpu.memory_space<vmem>>, vector<1x1x1x4x16xf32>
    %50 = vector.shape_cast %49 : vector<1x1x1x4x16xf32> to vector<4x16xf32>
    %c24_41 = arith.constant 24 : index
    %c112 = arith.constant 112 : index
    %51 = vector.load %arg9[%c24_41, %c112] : memref<40x128xf32, #tpu.memory_space<vmem>>, vector<4x16xf32>
    tpu.vector_store %arg9[%c24_41, %c112], %50 {strides = array<i32>} : memref<40x128xf32, #tpu.memory_space<vmem>>, vector<4x16xf32>,
    %c112_i32 = arith.constant 112 : i32
    %52 = tpu.dynamic_rotate %1 by %c112_i32 dim 1 : vector<4x128xf32>, i32 -> vector<4x128xf32>
    %c28 = arith.constant 28 : index
    %c0_42 = arith.constant 0 : index
    %53 = vector.load %arg9[%c28, %c0_42] : memref<40x128xf32, #tpu.memory_space<vmem>>, vector<4x128xf32>
    tpu.vector_store %arg9[%c28, %c0_42], %52 {strides = array<i32>} : memref<40x128xf32, #tpu.memory_space<vmem>>, vector<4x128xf32>,
    %c0_43 = arith.constant 0 : index
    %c0_44 = arith.constant 0 : index
    %c1_45 = arith.constant 1 : index
    %c0_46 = arith.constant 0 : index
    %c0_47 = arith.constant 0 : index
    %54 = vector.load %arg5[%c0_43, %c0_44, %c1_45, %c0_46, %c0_47] : memref<1x1x3x4x16xf32, #tpu.memory_space<vmem>>, vector<1x1x1x4x16xf32>
    %55 = vector.shape_cast %54 : vector<1x1x1x4x16xf32> to vector<4x16xf32>
    %c28_48 = arith.constant 28 : index
    %c112_49 = arith.constant 112 : index
    %56 = vector.load %arg9[%c28_48, %c112_49] : memref<40x128xf32, #tpu.memory_space<vmem>>, vector<4x16xf32>
    tpu.vector_store %arg9[%c28_48, %c112_49], %55 {strides = array<i32>} : memref<40x128xf32, #tpu.memory_space<vmem>>, vector<4x16xf32>,
    %c111_i32 = arith.constant 111 : i32
    %57 = tpu.dynamic_rotate %1 by %c111_i32 dim 1 : vector<4x128xf32>, i32 -> vector<4x128xf32>
    %cst_50 = arith.constant 0.000000e+00 : f32
    %58 = vector.shape_cast %6 : vector<1x128xi1> to vector<1x128xi1>
    %59 = vector.broadcast %58 : vector<1x128xi1> to vector<4x128xi1>
    %60 = vector.broadcast %cst_50 : f32 to vector<4x128xf32>
    %61 = arith.select %59, %57, %60 : vector<4x128xi1>, vector<4x128xf32>
    %c32 = arith.constant 32 : index
    %c0_51 = arith.constant 0 : index
    %62 = vector.load %arg9[%c32, %c0_51] : memref<40x128xf32, #tpu.memory_space<vmem>>, vector<4x128xf32>
    tpu.vector_store %arg9[%c32, %c0_51], %61 {strides = array<i32>} : memref<40x128xf32, #tpu.memory_space<vmem>>, vector<4x128xf32>,
    %c0_52 = arith.constant 0 : index
    %c0_53 = arith.constant 0 : index
    %c2_54 = arith.constant 2 : index
    %c0_55 = arith.constant 0 : index
    %c0_56 = arith.constant 0 : index
    %63 = vector.load %arg5[%c0_52, %c0_53, %c2_54, %c0_55, %c0_56] : memref<1x1x3x4x16xf32, #tpu.memory_space<vmem>>, vector<1x1x1x4x16xf32>
    %64 = vector.shape_cast %63 : vector<1x1x1x4x16xf32> to vector<4x16xf32>
    %c32_57 = arith.constant 32 : index
    %c112_58 = arith.constant 112 : index
    %65 = vector.load %arg9[%c32_57, %c112_58] : memref<40x128xf32, #tpu.memory_space<vmem>>, vector<4x16xf32>
    tpu.vector_store %arg9[%c32_57, %c112_58], %64 {strides = array<i32>} : memref<40x128xf32, #tpu.memory_space<vmem>>, vector<4x16xf32>,
    %cst_59 = arith.constant 0.000000e+00 : f32
    %66 = vector.broadcast %cst_59 : f32 to vector<4x128xf32>
    %c36 = arith.constant 36 : index
    %c0_60 = arith.constant 0 : index
    %67 = vector.load %arg9[%c36, %c0_60] : memref<40x128xf32, #tpu.memory_space<vmem>>, vector<4x128xf32>
    tpu.vector_store %arg9[%c36, %c0_60], %66 {strides = array<i32>} : memref<40x128xf32, #tpu.memory_space<vmem>>, vector<4x128xf32>,
    %c0_61 = arith.constant 0 : index
    %c0_62 = arith.constant 0 : index
    %68 = vector.load %arg6[%c0_61, %c0_62] : memref<8x40xf32, #tpu.memory_space<vmem>>, vector<8x40xf32>
    %c0_63 = arith.constant 0 : index
    %c0_64 = arith.constant 0 : index
    %69 = vector.load %arg9[%c0_63, %c0_64] : memref<40x128xf32, #tpu.memory_space<vmem>>, vector<40x128xf32>
    %cst_65 = arith.constant dense<0.000000e+00> : vector<8x128xf32>
    %70 = tpu.matmul %68, %69, %cst_65 {dimension_numbers = #tpu.dot_dimension_numbers<[1], [0], [0], [1], [0, 0, 1, 1], [], []>} : vector<8x40xf32>, vector<40x128xf32>, vector<8x128xf32> -> vector<8x128xf32>
    %c0_66 = arith.constant 0 : index
    %c0_67 = arith.constant 0 : index
    %71 = vector.load %arg7[%c0_66, %c0_67] : memref<8x1xf32, #tpu.memory_space<vmem>>, vector<8x1xf32>
    %72 = vector.broadcast %71 : vector<8x1xf32> to vector<8x128xf32>
    %73 = arith.addf %70, %72 : vector<8x128xf32>
    %c0_68 = arith.constant 0 : index
    %c0_69 = arith.constant 0 : index
    %c0_70 = arith.constant 0 : index
    %74 = vector.load %arg8[%c0_68, %c0_69, %c0_70] : memref<1x8x128xf32, #tpu.memory_space<vmem>>, vector<1x8x128xf32>
    %75 = vector.shape_cast %74 : vector<1x8x128xf32> to vector<8x128xf32>
    %76 = vector.shape_cast %73 : vector<8x128xf32> to vector<1x8x128xf32>
    tpu.vector_store %arg8[%c0_68, %c0_69, %c0_70], %76 {strides = array<i32>} : memref<1x8x128xf32, #tpu.memory_space<vmem>>, vector<1x8x128xf32>,
    return
  }
  func.func @transform_0(%arg0: i32, %arg1: i32) -> (i32, i32) {
    %c0_i32 = arith.constant 0 : i32
    %c0_i32_0 = arith.constant 0 : i32
    %c0_i32_1 = arith.constant 0 : i32
    return %c0_i32, %c0_i32_0 : i32, i32
  }
  func.func @transform_1(%arg0: i32, %arg1: i32) -> (i32, i32, i32) {
    %c0_i32 = arith.constant 0 : i32
    %c0_i32_0 = arith.constant 0 : i32
    return %arg0, %c0_i32, %arg1 : i32, i32, i32
  }
  func.func @transform_2(%arg0: i32, %arg1: i32) -> (i32, i32, i32, i32, i32) {
    %c0_i32 = arith.constant 0 : i32
    %c0_i32_0 = arith.constant 0 : i32
    %c0_i32_1 = arith.constant 0 : i32
    %c0_i32_2 = arith.constant 0 : i32
    return %arg0, %arg1, %c0_i32, %c0_i32_0, %c0_i32_1 : i32, i32, i32, i32, i32
  }
  func.func @transform_3(%arg0: i32, %arg1: i32) -> (i32, i32, i32, i32, i32) {
    %c0_i32 = arith.constant 0 : i32
    %c0_i32_0 = arith.constant 0 : i32
    %c0_i32_1 = arith.constant 0 : i32
    %c0_i32_2 = arith.constant 0 : i32
    return %arg0, %arg1, %c0_i32, %c0_i32_0, %c0_i32_1 : i32, i32, i32, i32, i32
  }
  func.func @transform_4(%arg0: i32, %arg1: i32) -> (i32, i32) {
    %c0_i32 = arith.constant 0 : i32
    %c0_i32_0 = arith.constant 0 : i32
    %c0_i32_1 = arith.constant 0 : i32
    return %c0_i32, %c0_i32_0 : i32, i32
  }
  func.func @transform_5(%arg0: i32, %arg1: i32) -> (i32, i32) {
    %c0_i32 = arith.constant 0 : i32
    %c0_i32_0 = arith.constant 0 : i32
    %c0_i32_1 = arith.constant 0 : i32
    return %c0_i32, %c0_i32_0 : i32, i32
  }
  func.func @transform_6(%arg0: i32, %arg1: i32) -> (i32, i32, i32) {
    %c0_i32 = arith.constant 0 : i32
    %c0_i32_0 = arith.constant 0 : i32
    return %arg0, %c0_i32, %arg1 : i32, i32, i32
  }
}

</mosaic_0001>

<bundles_post_ra>
// kernel: tile.9
= control target key start
LH: loop header
LB: loop body
LE: loop exit
PB: predicated region body
PF: predicated region fallthrough
CT: control target
= control target key end

     0   :  { %s69_s10 = smov 112   ;;  %s70_s11 = smov 80   ;;  %vm3_vm0 = vcmask 130048   ;;  %vm9_vm1 = vcmask 1048448   ;;  %vm15_vm2 = vcmask 917248   ;;  %vm21_vm3 = vcmask 786048   ;;  %s113_s0 = inlined_call_operand.vmem [shape: s32[8,16], index: 0, kind: input, shape index: {}]   ;;  %s114_s1 = inlined_call_operand.vmem [shape: s32[1,128], index: 1, kind: output, shape index: {}]  }
   0x1   :  { %v55_v0 = vld [vmem:[%s113_s0 + $0x7] sm:$0x1]   ;;  %v57_v1 = vld [vmem:[%s113_s0 + $0x5] sm:$0x1]   ;;  %v56_v2 = vld [vmem:[%s113_s0 + $0x6] sm:$0x1]  }
   0x2   :  { %7 = vrot.lane.b32.xlu0 %v55_v0, %s69_s10  ;;  %19 = vrot.lane.b32.xlu1 %v57_v1, %s70_s11  ;;  %v58_v3 = vld [vmem:[%s113_s0 + $0x4] sm:$0x1]   ;;  %v2_v4 = vld [vmem:[%s113_s0] sm:$0x1]   ;;  %s71_s18 = smov 96   ;;  %s72_s19 = smov 64  }
   0x3   :  { %4 = vst.msk [vmem:[#allocation0] sm:$0x1] %vm3_vm0, %v2_v4   ;;  %v59_v5 = vld [vmem:[%s113_s0 + $0x3] sm:$0x1]   ;;  %v60_v6 = vld [vmem:[%s113_s0 + $0x2] sm:$0x1]  }
   0x4   :  { %s73_s24 = smov 48   ;;  %s74_s25 = smov 32   ;;  %v61_v7 = vld [vmem:[%s113_s0 + $0x1] sm:$0x1]   ;;  %vm27_vm4 = vcmask 654848   ;;  %vm33_vm5 = vcmask 523648  }
   0x5   :  { %s75_s0 = smov 16   ;;  %vm39_vm6 = vcmask 392448   ;;  %vm45_vm7 = vcmask 261248  }
   0x6   :  { %13 = vrot.lane.b32.xlu0 %v56_v2, %s71_s18  ;;  %25 = vrot.lane.b32.xlu1 %v58_v3, %s72_s19 }
   0xa   :  { %31 = vrot.lane.b32.xlu0 %v59_v5, %s73_s24  ;;  %37 = vrot.lane.b32.xlu1 %v60_v6, %s74_s25 }
   0xe   :  { %43 = vrot.lane.b32.xlu0 %v61_v7, %s75_s0 }
  0x74   :  { %v8_v8 = vpop.permute.xlu0 %7   ;;  %v20_v9 = vpop.permute.xlu1 %19  }
  0x75   :  { %10 = vst.msk [vmem:[#allocation0] sm:$0x1] %vm9_vm1, %v8_v8  }
  0x78   :  { %v14_v10 = vpop.permute.xlu0 %13   ;;  %v26_v11 = vpop.permute.xlu1 %25  }
  0x79   :  { %16 = vst.msk [vmem:[#allocation0] sm:$0x1] %vm15_vm2, %v14_v10  }
  0x7a   :  { %22 = vst.msk [vmem:[#allocation0] sm:$0x1] %vm21_vm3, %v20_v9  }
  0x7b   :  { %28 = vst.msk [vmem:[#allocation0] sm:$0x1] %vm27_vm4, %v26_v11  }
  0x7c   :  { %v32_v12 = vpop.permute.xlu0 %31   ;;  %v38_v13 = vpop.permute.xlu1 %37  }
  0x7d   :  { %34 = vst.msk [vmem:[#allocation0] sm:$0x1] %vm33_vm5, %v32_v12  }
  0x7e   :  { %40 = vst.msk [vmem:[#allocation0] sm:$0x1] %vm39_vm6, %v38_v13  }
  0x80   :  { %v44_v14 = vpop.permute.xlu0 %43  }
  0x81   :  { %46 = vst.msk [vmem:[#allocation0] sm:$0x1] %vm45_vm7, %v44_v14  }
  0x88   :  { %v51_v15 = vld [vmem:[#allocation0] sm:$0x1] }
  0x89   :  { %54 = vst [vmem:[%s114_s1] sm:$0x1] %v51_v15 }

// kernel: csdn_tem_forward.1
= control target key start
LH: loop header
LB: loop body
LE: loop exit
PB: predicated region body
PF: predicated region fallthrough
CT: control target
= control target key end

     0   :  { %s822_s21 = smov 0   ;;  %s824_s22 = smov 0   ;;  %s915_s0 = inlined_call_operand.vmem [shape: s32[1,128], index: 0, kind: input, shape index: {}]   ;;  %s916_s1 = inlined_call_operand.vmem [shape: f32[2,4,256], index: 1, kind: input, shape index: {}]   ;;  %s917_s2 = inlined_call_operand.vmem [shape: f32[2,2,3,4,16], index: 2, kind: input, shape index: {}]   ;;  %s918_s3 = inlined_call_operand.vmem [shape: f32[2,2,3,4,16], index: 3, kind: input, shape index: {}]   ;;  %s919_s4 = inlined_call_operand.vmem [shape: f32[8,40], index: 4, kind: input, shape index: {}]   ;;  %s920_s5 = inlined_call_operand.vmem [shape: f32[8,1], index: 5, kind: input, shape index: {}]   ;;  %s921_s6 = inlined_call_operand.vmem [shape: f32[2,8,256], index: 6, kind: output, shape index: {}]  }
   0x1   :  { %s826_s23 = smov 0   ;;  %s828_s24 = smov 0  }
   0x2   :  { %s830_s25 = smov 0  }
   0x3 LB: > { %s25_s26 = sadd.s32 1, %s766_s23  ;;  %s28_s27 = sadd.s32 1, %s770_s24  ;;  %s774_s25 = sphi %s830_s25, %s16_s25   ;;  %s770_s24 = sphi %s828_s24, %s925_s24   ;;  %s766_s23 = sphi %s826_s23, %s924_s23   ;;  %s762_s22 = sphi %s824_s22, %s923_s22   ;;  %s758_s21 = sphi %s822_s21, %s922_s21  }
   0x4   : > { %p26_p0 = scmp.ge.s32.totalorder %s25_s26, 2  ;;  %p648_p1 = scmp.ge.s32.totalorder %s774_s25, 1 }
   0x5   : > { %p263_p2 = scmp.lt.s32.totalorder %s774_s25, 5 }
   0x6   : > { %s927_s26 = smov (%p26_p0, %s25_s26), 0  ;;  %s929_s27 = smov (!%p26_p0, %s28_s27), %s770_s24 }
   0x7   : > { %p264_p3 = pnand %p648_p1, %p263_p2  ;;  %p30_p4 = scmp.ge.s32.totalorder %s929_s27, 2 }
   0x8   : > { %p317_p5 = scmp.lt.s32.totalorder (!%p264_p3), %s762_s22, 1  ;;  %p319_p6 = scmp.lt.s32.totalorder (!%p264_p3), %s758_s21, 1 }
   0x9   : > { %s931_s27 = smov (%p30_p4, %s929_s27), 0  ;;  %267 = sbr.rel (%p264_p3) target bundleno = 361 (0x169), region = 44 }
   0xa   : > { %s778_s14 = smov (!%p264_p3), 112   ;;  %s779_s15 = smov (!%p264_p3), 111  }
   0xb   : > { %s780_s19 = smov (!%p264_p3), 113   ;;  %s781_s20 = smov (!%p264_p3), 127  }
   0xe   : > { %v776_v0 = vmov 0   ;;  %s933_s22 = smov (!%p317_p5, %s762_s22), 1  ;;  %v777_v1 = vmov 0.0   ;;  %s935_s21 = smov (!%p319_p6, %s758_s21), 1  ;;  %vm785_vm0 = vmmov 0   ;;  %v435_v6 = vld [vmem:[%s920_s5] sm:$0xff]  ;;  %v358_v7 = vlaneseq }
   0xf   : > { %734 = vset.pattern.permute.xlu1 %v776_v0  ;;  %735 = vset.pattern.permute.xlu0 %v776_v0  ;;  %428 = vst [vmem:[#allocation2 + $0x24] sm:$0xf] %v777_v1  ;;  %s649_s28 = sshll.u32 %s933_s22, 1  ;;  %s682_s29 = smul.u32 6, %s933_s22  ;;  %v352_v8 = vld [vmem:[%s915_s0] sm:$0x1] }
  0x10   : > { %668 = vmatprep.subr.mxu0 %v777_v1  ;;  %s854_s30 = sadd.s32 %s649_s28, %s935_s21  ;;  %s681_s7 = smul.u32 3, %s935_s21  ;;  %678 = vmatprep.mubr.msk.f32.mxu0 %vm785_vm0, %v777_v1  ;;  %v359_v9 = vshrl.u32 %v358_v7, 7  ;;  %vm354_vm1 = vcmp.le.s32.totalorder %v352_v8, 14  ;;  %vm353_vm2 = vcmp.ge.s32.totalorder %v352_v8, 1  ;;  %vm405_vm4 = vcmask 1044352   ;;  %v429_v39 = vld [vmem:[%s919_s4] sm:$0xff] }
  0x11   : > { %s650_s8 = sshll.u32 %s854_s30, 2  ;;  %s782_s21 = smov 15   ;;  %v376_v11 = vsel %vm354_vm1, 1, %v776_v0  ;;  %v357_v13 = vsel %vm353_vm2, 1, %v776_v0  ;;  %vm366_vm6 = vcmask 125952   ;;  %vm441_vm7 = vcmask 326656  }
  0x12   : > { %s324_s11 = scalar_lea.vmem %s916_s1, %s650_s8  ;;  %s860_s12 = sadd.s32 %s682_s29, %s681_s7  ;;  %v360_v10 = vsub.s32 0, %v359_v9 }
  0x13   : > { %v351_v2 = vld [vmem:[%s324_s11] sm:$0xf]  ;;  %s651_s13 = sshll.u32 %s860_s12, 2  ;;  %s783_s22 = smov 1  }
  0x14   : > { %407 = vrot.lane.b32.xlu1 %v351_v2, %s778_s14  ;;  %391 = vst [vmem:[#allocation2 + $0x10] sm:$0xf] %v351_v2  ;;  %417 = vrot.lane.b32.xlu0 %v351_v2, %s779_s15  ;;  %s342_s18 = scalar_lea.vmem %s918_s3, %s651_s13  ;;  %s784_s28 = smov 17   ;;  %v380_v12 = vrot.slane %v376_v11, %v360_v10  ;;  %v361_v14 = vrot.slane %v357_v13, %v360_v10 }
  0x15   : > { %v658_v3 = vld [vmem:[%s342_s18 + $0x8] sm:$0xf]  ;;  %v657_v4 = vld [vmem:[%s342_s18 + $0x4] sm:$0xf]  ;;  %v400_v5 = vld [vmem:[%s342_s18] sm:$0xf]  ;;  %s333_s15 = scalar_lea.vmem %s917_s2, %s651_s13 }
  0x16   : > { %s786_s8 = smov 16   ;;  %vm381_vm3 = vcmp.eq.s32.totalorder %v380_v12, 1  ;;  %vm362_vm5 = vcmp.eq.s32.totalorder %v361_v14, 1  ;;  %v656_v24 = vld [vmem:[%s333_s15 + $0x8] sm:$0xf]  ;;  %s654_s16 = sshll.u32 %s854_s30, 3 }
  0x17   : > { %v365_v31 = vld [vmem:[%s333_s15] sm:$0xf]  ;;  %v655_v35 = vld [vmem:[%s333_s15 + $0x4] sm:$0xf] }
  0x18   : > { %424 = vrot.lane.b32.xlu1 %v658_v3, %s778_s14  ;;  %396 = vrot.lane.b32.xlu0 %v351_v2, %s780_s19  ;;  %s350_s19 = scalar_lea.vmem %s921_s6, %s654_s16 }
  0x1c   : > { %413 = vrot.lane.b32.xlu1 %v657_v4, %s778_s14  ;;  %402 = vrot.lane.b32.xlu0 %v400_v5, %s778_s14 }
  0x20   : > { %392 = vrot.lane.b32.xlu0 %v351_v2, %s781_s20  ;;  %374 = vrot.lane.b32.xlu1 %v351_v2, %s782_s21 }
  0x24   : > { %387 = vrot.lane.b32.xlu0 %v351_v2, %s783_s22  ;;  %355 = vrot.lane.b32.xlu1 %v351_v2, %s784_s28 }
  0x28   : > { %368 = vrot.lane.b32.xlu0 %v351_v2, %s786_s8  ;;  %438 = vperm.xlu1 %734, %v435_v6  }
  0x86   : > { %v408_v15 = vpop.permute.xlu1 %407  ;;  %v418_v16 = vpop.permute.xlu0 %417 }
  0x87   : > { %409 = vst [vmem:[#allocation2 + $0x1c] sm:$0xf] %v408_v15  ;;  %v419_v17 = vsel %vm381_vm3, %v418_v16, 0.0 }
  0x88   : > { %420 = vst [vmem:[#allocation2 + $0x20] sm:$0xf] %v419_v17 }
  0x8a   : > { %v425_v18 = vpop.permute.xlu1 %424  ;;  %v397_v19 = vpop.permute.xlu0 %396 }
  0x8b   : > { %427 = vst.msk [vmem:[#allocation2 + $0x20] sm:$0xf] %vm405_vm4, %v425_v18  ;;  %v398_v20 = vsel %vm362_vm5, %v397_v19, 0.0 }
  0x8c   : > { %399 = vst [vmem:[#allocation2 + $0x18] sm:$0xf] %v398_v20 }
  0x8e   : > { %v414_v21 = vpop.permute.xlu1 %413  ;;  %v403_v22 = vpop.permute.xlu0 %402 }
  0x8f   : > { %416 = vst.msk [vmem:[#allocation2 + $0x1c] sm:$0xf] %vm405_vm4, %v414_v21  ;;  %406 = vst.msk [vmem:[#allocation2 + $0x18] sm:$0xf] %vm405_vm4, %v403_v22 }
  0x92   : > { %v393_v23 = vpop.permute.xlu0 %392  ;;  %v375_v25 = vpop.permute.xlu1 %374  ;;  %v434_v26 = vld [vmem:[#allocation2 + $0x20] sm:$0xff] }
  0x93   : > { %v394_v27 = vsel %vm381_vm3, %v393_v23, 0.0  ;;  %v382_v28 = vsel %vm381_vm3, %v375_v25, 0.0  ;;  %669 = vmatpush3.msra.mxu0 %v434_v26 }
  0x94   : > { %395 = vst [vmem:[#allocation2 + $0x14] sm:$0xf] %v394_v27  ;;  %383 = vst [vmem:[#allocation2 + $0x8] sm:$0xf] %v382_v28  ;;  %670 = vmatprep.subr.mxu0 %v777_v1 }
  0x95   : > { %386 = vst.msk [vmem:[#allocation2 + $0x8] sm:$0xf] %vm366_vm6, %v656_v24 }
  0x96   : > { %v388_v29 = vpop.permute.xlu0 %387  ;;  %v433_v30 = vld [vmem:[#allocation2 + $0x18] sm:$0xff]  ;;  %v356_v32 = vpop.permute.xlu1 %355 }
  0x97   : > { %v389_v33 = vsel %vm362_vm5, %v388_v29, 0.0  ;;  %671 = vmatpush3.msra.mxu0 %v433_v30  ;;  %v363_v34 = vsel %vm362_vm5, %v356_v32, 0.0 }
  0x98   : > { %390 = vst [vmem:[#allocation2 + $0xc] sm:$0xf] %v389_v33  ;;  %364 = vst [vmem:[#allocation2] sm:$0xf] %v363_v34  ;;  %672 = vmatprep.subr.mxu0 %v777_v1 }
  0x99   : > { %367 = vst.msk [vmem:[#allocation2] sm:$0xf] %vm366_vm6, %v365_v31 }
  0x9a   : > { %v369_v36 = vpop.permute.xlu0 %368 }
  0x9b   : > { %370 = vst [vmem:[#allocation2 + $0x4] sm:$0xf] %v369_v36  ;;  %v432_v37 = vld [vmem:[#allocation2 + $0x10] sm:$0xff] }
  0x9c   : > { %373 = vst.msk [vmem:[#allocation2 + $0x4] sm:$0xf] %vm366_vm6, %v655_v35  ;;  %673 = vmatpush3.msra.mxu0 %v432_v37 }
  0x9d   : > { %674 = vmatprep.subr.mxu0 %v777_v1 }
  0x9f   : > { %v431_v38 = vld [vmem:[#allocation2 + $0x8] sm:$0xff] }
  0xa0   : > { %675 = vmatpush3.msra.mxu0 %v431_v38 }
  0xa1   : > { %676 = vmatprep.subr.mxu0 %v777_v1 }
  0xa3   : > { %v430_v40 = vld [vmem:[#allocation2] sm:$0xff]  ;;  %v439_v41 = vpop.permute.xlu1 %438 }
  0xa4   : > { %677 = vmatpush3.msra.mxu0 %v430_v40 }
  0xa5   : > { %679 = vmatmul.mubr.msk.f32.vlgmr.msra.gmra.mxu0 %vm441_vm7, %v429_v39 }
 0x165   : > { %v511_v42 = vpop.f32.mrf.mxu0 }
 0x166   : > { %v512_v43 = vadd.f32 %v511_v42, %v439_v41 }
 0x167   : > { %v680_v44 = vpop.f32.mrf.mxu0 }
 0x168   : > { %515 = vst [vmem:[%s350_s19] sm:$0xff] %v512_v43 }
 0x169 PF: > { %s16_s25 = sadd.s32 1, %s774_s25   ;;  %s922_s21 = smov %s766_s23 }
 0x16a   : > { %p13_p7 = scmp.ge.s32.totalorder %s16_s25, 6   ;;  %s923_s22 = smov %s770_s24 }
 0x16b   : > { %s924_s23 = smov %s927_s26  ;;  %s925_s24 = smov %s931_s27 }
 0x16c   :  { %15 = sbr.rel (!%p13_p7) target bundleno = 3 (0x3), region = 84 }

</bundles_post_ra>
